<compile_context>
chip_gen: v6e
topology: v6e:2x2x1
jax: 0.10.0
libtpu: 0.0.40
codegen_flags: <defaults>
</compile_context>

<pallas_src>
import jax
import jax.numpy as jnp
from jax.experimental import pallas as pl
from jax.experimental.pallas import tpu as pltpu

IN_C = 3
HID_C = 32
OUT_C = 3
TARGET_PIX_TILE = 16384  # lane-aligned pixel tile target (sweepable 8192-24576)


def stainnet_kernel(x_ref, w1_ref, b1_ref, w2_ref, b2_ref, w3t_ref, b3_ref,
                    o_ref):
    # x_ref: [IN_C, T] f32 (channels on sublanes, pixels on lanes).
    # norm / un_norm are pre-folded into w1/b1 and w3t/b3 by the wrapper.

    # ---- Layer 1 (3 -> 32) on the VPU: 3 broadcast-FMAs. -------------------
    # K=3 would waste >95% of an MXU weight column; broadcast-multiply rides
    # in VALU slack under the layer-2 MXU work instead.
    h1 = (w1_ref[:, 0:1] * x_ref[0:1, :]
          + w1_ref[:, 1:2] * x_ref[1:2, :]
          + w1_ref[:, 2:3] * x_ref[2:3, :]
          + b1_ref[...])
    h1 = jnp.maximum(h1, 0.0)

    # ---- Layer 2 (32 -> 32) on the MXU, bf16 operands, f32 accumulate. -----
    h2 = jnp.dot(w2_ref[...], h1.astype(jnp.bfloat16),
                 preferred_element_type=jnp.float32)
    h2 = jnp.maximum(h2 + b2_ref[...], 0.0)

    # ---- Layer 3 (32 -> 3) on VPU + XLU: weighted sublane reductions. ------
    # N=3 on the MXU would re-load h2 into weight registers every 128 lanes.
    rows = []
    for o in range(OUT_C):
        rows.append(jnp.sum(h2 * w3t_ref[:, o:o + 1], axis=0, keepdims=True))
    y = jnp.concatenate(rows, axis=0) + b3_ref[...]

    # un_norm scale/shift already folded into w3t/b3; only the clamp remains.
    o_ref[...] = jnp.clip(y, 0.0, 1.0).astype(o_ref.dtype)


def _round_up(a, b):
    return (a + b - 1) // b * b


def stainnet_transform(images, params, *, target_tile=TARGET_PIX_TILE):
    """images: float32 NCHW [N, 3, H, W] in [0, 1].  Returns same shape."""
    w1, b1, w2, b2, w3, b3 = params
    N, C, H, W = images.shape
    assert C == IN_C

    # Fold norm: w1 @ (2x - 1) + b1 == (2*w1) @ x + (b1 - sum(w1, axis=1)).
    w1f = (w1 * 2.0).astype(jnp.float32)
    b1f = (b1 - jnp.sum(w1, axis=1, keepdims=True)).astype(jnp.float32)
    # Layer-2 weights go to the MXU as bf16 (f32 operands ~3x the passes).
    w2bf = w2.astype(jnp.bfloat16)
    # Fold un_norm: 0.5*(w3 @ h + b3) + 0.5 == (0.5*w3) @ h + (0.5*b3 + 0.5).
    # Pass w3 transposed ([32, 3]) so the kernel slices [32, 1] columns.
    w3tf = (w3 * 0.5).T.astype(jnp.float32)
    b3f = (b3 * 0.5 + 0.5).astype(jnp.float32)

    HW = H * W
    x = images.reshape(N, C, HW)  # free reshape: no transpose, no padding

    # Largest lane-aligned pixel tile within the VMEM budget; small images
    # use the full row (block == full dim is always layout-legal).
    pix_tile = HW if HW <= target_tile else target_tile
    num_pix_tiles = pl.cdiv(HW, pix_tile)
    # Ensure >= 2 grid steps (when splittable on a 128-lane boundary) so
    # v7x's two TensorCores both get work for single-image inputs.
    if N * num_pix_tiles < 2 and HW >= 256:
        pix_tile = _round_up(pl.cdiv(HW, 2), 128)
        num_pix_tiles = pl.cdiv(HW, pix_tile)
    grid = (N, num_pix_tiles)

    def const_spec(shape):
        return pl.BlockSpec(shape, lambda n, i: (0, 0))

    out = pl.pallas_call(
        stainnet_kernel,
        out_shape=jax.ShapeDtypeStruct((N, OUT_C, HW), jnp.float32),
        grid_spec=pltpu.PrefetchScalarGridSpec(
            num_scalar_prefetch=0,
            grid=grid,
            in_specs=[
                pl.BlockSpec((pl.Squeezed(), IN_C, pix_tile),
                             lambda n, i: (n, 0, i)),
                const_spec((HID_C, IN_C)),    # w1 (norm folded), f32
                const_spec((HID_C, 1)),       # b1 (norm folded), f32
                const_spec((HID_C, HID_C)),   # w2, bf16
                const_spec((HID_C, 1)),       # b2, f32
                const_spec((HID_C, OUT_C)),   # w3^T (un_norm folded), f32
                const_spec((OUT_C, 1)),       # b3 (un_norm folded), f32
            ],
            out_specs=pl.BlockSpec((pl.Squeezed(), OUT_C, pix_tile),
                                   lambda n, i: (n, 0, i)),
        ),
        compiler_params=pltpu.CompilerParams(
            dimension_semantics=("parallel", "parallel"),
            vmem_limit_bytes=40 << 20),
    )(x, w1f, b1f, w2bf, b2, w3tf, b3f)

    return out.reshape(N, OUT_C, H, W)


def init_params(key):
    """Deterministic synthetic weights matching the Conv2d(kernel_size=1) shapes.

    PyTorch Conv2d weight shape is [out_c, in_c, 1, 1]; with 1x1 kernels this
    collapses to a dense [out_c, in_c] matrix, which is what the kernel uses.
    """
    # TODO(synk): real module loads pretrained weights from a .pth file; here
    # we use deterministic synthetic params of the same shapes.
    k1, k2, k3, k4, k5, k6 = jax.random.split(key, 6)
    w1 = jax.random.normal(k1, (HID_C, IN_C), jnp.float32) * 0.3
    b1 = jax.random.normal(k2, (HID_C, 1), jnp.float32) * 0.05
    w2 = jax.random.normal(k3, (HID_C, HID_C), jnp.float32) * 0.15
    b2 = jax.random.normal(k4, (HID_C, 1), jnp.float32) * 0.05
    w3 = jax.random.normal(k5, (OUT_C, HID_C), jnp.float32) * 0.15
    b3 = jax.random.normal(k6, (OUT_C, 1), jnp.float32) * 0.05
    return w1, b1, w2, b2, w3, b3


def reference(images, params):
    """Pure-JAX f32 reference of the same forward pass (for sanity check)."""
    w1, b1, w2, b2, w3, b3 = params
    x = (images - 0.5) / 0.5  # NCHW
    x = jnp.einsum('oc,nchw->nohw', w1, x) + b1.reshape(1, -1, 1, 1)
    x = jnp.maximum(x, 0.0)
    x = jnp.einsum('oc,nchw->nohw', w2, x) + b2.reshape(1, -1, 1, 1)
    x = jnp.maximum(x, 0.0)
    x = jnp.einsum('oc,nchw->nohw', w3, x) + b3.reshape(1, -1, 1, 1)
    return jnp.clip(x * 0.5 + 0.5, 0.0, 1.0)


if __name__ == "__main__":
    key = jax.random.PRNGKey(0)
    kp, kx = jax.random.split(key)
    params = init_params(kp)

    # Small NCHW input consistent with an RGB image batch.
    images = jax.random.uniform(kx, (2, 3, 16, 16), jnp.float32)

    out = stainnet_transform(images, params)
    out = jax.block_until_ready(out)

    ref = reference(images, params)
    assert out.shape == (2, 3, 16, 16)
    # Layer 2 uses bf16 MXU operands, so tolerance is relaxed vs the f32
    # reference (per perf review; fine for a [0,1]-clipped image transform).
    err = float(jnp.max(jnp.abs(out - ref)))
    assert err < 1e-2, err

    print("KERNEL_OK")
</pallas_src>

<mosaic_0001>
module attributes {stable_mosaic.version = 11 : i64} {
  func.func @stainnet_kernel(%arg0: i32, %arg1: i32, %arg2: memref<1x3x256xf32, #tpu.memory_space<vmem>>, %arg3: memref<32x3xf32, #tpu.memory_space<vmem>>, %arg4: memref<32x1xf32, #tpu.memory_space<vmem>>, %arg5: memref<32x32xbf16, #tpu.memory_space<vmem>>, %arg6: memref<32x1xf32, #tpu.memory_space<vmem>>, %arg7: memref<32x3xf32, #tpu.memory_space<vmem>>, %arg8: memref<3x1xf32, #tpu.memory_space<vmem>>, %arg9: memref<1x3x256xf32, #tpu.memory_space<vmem>>) attributes {dimension_semantics = [#tpu.dimension_semantics<parallel>, #tpu.dimension_semantics<parallel>], iteration_bounds = array<i64: 2, 1>, scalar_prefetch = 0 : i64, scratch_operands = 0 : i64, tpu.core_type = #tpu.core_type<tc>, window_params = [{transform_indices = @transform_0, window_bounds = array<i64: 1, 3, 256>}, {pipeline_mode = #tpu.pipeline_mode<synchronous>, transform_indices = @transform_1, window_bounds = array<i64: 32, 3>}, {pipeline_mode = #tpu.pipeline_mode<synchronous>, transform_indices = @transform_2, window_bounds = array<i64: 32, 1>}, {pipeline_mode = #tpu.pipeline_mode<synchronous>, transform_indices = @transform_3, window_bounds = array<i64: 32, 32>}, {pipeline_mode = #tpu.pipeline_mode<synchronous>, transform_indices = @transform_4, window_bounds = array<i64: 32, 1>}, {pipeline_mode = #tpu.pipeline_mode<synchronous>, transform_indices = @transform_5, window_bounds = array<i64: 32, 3>}, {pipeline_mode = #tpu.pipeline_mode<synchronous>, transform_indices = @transform_6, window_bounds = array<i64: 3, 1>}, {transform_indices = @transform_7, window_bounds = array<i64: 1, 3, 256>}]} {
    %c0 = arith.constant 0 : index
    %c0_0 = arith.constant 0 : index
    %0 = vector.load %arg3[%c0, %c0_0] : memref<32x3xf32, #tpu.memory_space<vmem>>, vector<32x1xf32>
    %c0_1 = arith.constant 0 : index
    %c0_2 = arith.constant 0 : index
    %c0_3 = arith.constant 0 : index
    %1 = vector.load %arg2[%c0_1, %c0_2, %c0_3] : memref<1x3x256xf32, #tpu.memory_space<vmem>>, vector<1x1x256xf32>
    %2 = vector.shape_cast %1 : vector<1x1x256xf32> to vector<1x256xf32>
    %3 = vector.broadcast %0 : vector<32x1xf32> to vector<32x256xf32>
    %4 = vector.broadcast %2 : vector<1x256xf32> to vector<32x256xf32>
    %5 = arith.mulf %3, %4 : vector<32x256xf32>
    %c0_4 = arith.constant 0 : index
    %c1 = arith.constant 1 : index
    %6 = vector.load %arg3[%c0_4, %c1] : memref<32x3xf32, #tpu.memory_space<vmem>>, vector<32x1xf32>
    %c0_5 = arith.constant 0 : index
    %c1_6 = arith.constant 1 : index
    %c0_7 = arith.constant 0 : index
    %7 = vector.load %arg2[%c0_5, %c1_6, %c0_7] : memref<1x3x256xf32, #tpu.memory_space<vmem>>, vector<1x1x256xf32>
    %8 = vector.shape_cast %7 : vector<1x1x256xf32> to vector<1x256xf32>
    %9 = vector.broadcast %6 : vector<32x1xf32> to vector<32x256xf32>
    %10 = vector.broadcast %8 : vector<1x256xf32> to vector<32x256xf32>
    %11 = arith.mulf %9, %10 : vector<32x256xf32>
    %12 = arith.addf %5, %11 : vector<32x256xf32>
    %c0_8 = arith.constant 0 : index
    %c2 = arith.constant 2 : index
    %13 = vector.load %arg3[%c0_8, %c2] : memref<32x3xf32, #tpu.memory_space<vmem>>, vector<32x1xf32>
    %c0_9 = arith.constant 0 : index
    %c2_10 = arith.constant 2 : index
    %c0_11 = arith.constant 0 : index
    %14 = vector.load %arg2[%c0_9, %c2_10, %c0_11] : memref<1x3x256xf32, #tpu.memory_space<vmem>>, vector<1x1x256xf32>
    %15 = vector.shape_cast %14 : vector<1x1x256xf32> to vector<1x256xf32>
    %16 = vector.broadcast %13 : vector<32x1xf32> to vector<32x256xf32>
    %17 = vector.broadcast %15 : vector<1x256xf32> to vector<32x256xf32>
    %18 = arith.mulf %16, %17 : vector<32x256xf32>
    %19 = arith.addf %12, %18 : vector<32x256xf32>
    %c0_12 = arith.constant 0 : index
    %c0_13 = arith.constant 0 : index
    %20 = vector.load %arg4[%c0_12, %c0_13] : memref<32x1xf32, #tpu.memory_space<vmem>>, vector<32x1xf32>
    %21 = vector.broadcast %20 : vector<32x1xf32> to vector<32x256xf32>
    %22 = arith.addf %19, %21 : vector<32x256xf32>
    %cst = arith.constant 0.000000e+00 : f32
    %23 = vector.broadcast %cst : f32 to vector<32x256xf32>
    %24 = arith.maximumf %22, %23 : vector<32x256xf32>
    %c0_14 = arith.constant 0 : index
    %c0_15 = arith.constant 0 : index
    %25 = vector.load %arg5[%c0_14, %c0_15] : memref<32x32xbf16, #tpu.memory_space<vmem>>, vector<32x32xbf16>
    %26 = arith.truncf %24 : vector<32x256xf32> to vector<32x256xbf16>
    %cst_16 = arith.constant dense<0.000000e+00> : vector<32x256xf32>
    %27 = tpu.matmul %25, %26, %cst_16 {dimension_numbers = #tpu.dot_dimension_numbers<[1], [0], [0], [1], [0, 0, 1, 1], [], []>} : vector<32x32xbf16>, vector<32x256xbf16>, vector<32x256xf32> -> vector<32x256xf32>
    %c0_17 = arith.constant 0 : index
    %c0_18 = arith.constant 0 : index
    %28 = vector.load %arg6[%c0_17, %c0_18] : memref<32x1xf32, #tpu.memory_space<vmem>>, vector<32x1xf32>
    %29 = vector.broadcast %28 : vector<32x1xf32> to vector<32x256xf32>
    %30 = arith.addf %27, %29 : vector<32x256xf32>
    %cst_19 = arith.constant 0.000000e+00 : f32
    %31 = vector.broadcast %cst_19 : f32 to vector<32x256xf32>
    %32 = arith.maximumf %30, %31 : vector<32x256xf32>
    %c0_20 = arith.constant 0 : index
    %c0_21 = arith.constant 0 : index
    %33 = vector.load %arg7[%c0_20, %c0_21] : memref<32x3xf32, #tpu.memory_space<vmem>>, vector<32x1xf32>
    %34 = vector.broadcast %33 : vector<32x1xf32> to vector<32x256xf32>
    %35 = arith.mulf %32, %34 : vector<32x256xf32>
    %cst_22 = arith.constant dense<0.000000e+00> : vector<256xf32>
    %36 = vector.multi_reduction <add>, %35, %cst_22 [0] : vector<32x256xf32> to vector<256xf32>
    %37 = vector.shape_cast %36 : vector<256xf32> to vector<1x256xf32>
    %c0_23 = arith.constant 0 : index
    %c1_24 = arith.constant 1 : index
    %38 = vector.load %arg7[%c0_23, %c1_24] : memref<32x3xf32, #tpu.memory_space<vmem>>, vector<32x1xf32>
    %39 = vector.broadcast %38 : vector<32x1xf32> to vector<32x256xf32>
    %40 = arith.mulf %32, %39 : vector<32x256xf32>
    %cst_25 = arith.constant dense<0.000000e+00> : vector<256xf32>
    %41 = vector.multi_reduction <add>, %40, %cst_25 [0] : vector<32x256xf32> to vector<256xf32>
    %42 = vector.shape_cast %41 : vector<256xf32> to vector<1x256xf32>
    %c0_26 = arith.constant 0 : index
    %c2_27 = arith.constant 2 : index
    %43 = vector.load %arg7[%c0_26, %c2_27] : memref<32x3xf32, #tpu.memory_space<vmem>>, vector<32x1xf32>
    %44 = vector.broadcast %43 : vector<32x1xf32> to vector<32x256xf32>
    %45 = arith.mulf %32, %44 : vector<32x256xf32>
    %cst_28 = arith.constant dense<0.000000e+00> : vector<256xf32>
    %46 = vector.multi_reduction <add>, %45, %cst_28 [0] : vector<32x256xf32> to vector<256xf32>
    %47 = vector.shape_cast %46 : vector<256xf32> to vector<1x256xf32>
    %48 = tpu.concatenate %37, %42, %47 in 0 : vector<1x256xf32>, vector<1x256xf32>, vector<1x256xf32> -> vector<3x256xf32>
    %c0_29 = arith.constant 0 : index
    %c0_30 = arith.constant 0 : index
    %49 = vector.load %arg8[%c0_29, %c0_30] : memref<3x1xf32, #tpu.memory_space<vmem>>, vector<3x1xf32>
    %50 = vector.broadcast %49 : vector<3x1xf32> to vector<3x256xf32>
    %51 = arith.addf %48, %50 : vector<3x256xf32>
    %cst_31 = arith.constant 0.000000e+00 : f32
    %cst_32 = arith.constant 1.000000e+00 : f32
    %52 = vector.broadcast %cst_31 : f32 to vector<3x256xf32>
    %53 = arith.maximumf %52, %51 : vector<3x256xf32>
    %54 = vector.broadcast %cst_32 : f32 to vector<3x256xf32>
    %55 = arith.minimumf %54, %53 : vector<3x256xf32>
    %c0_33 = arith.constant 0 : index
    %c0_34 = arith.constant 0 : index
    %c0_35 = arith.constant 0 : index
    %56 = vector.load %arg9[%c0_33, %c0_34, %c0_35] : memref<1x3x256xf32, #tpu.memory_space<vmem>>, vector<1x3x256xf32>
    %57 = vector.shape_cast %56 : vector<1x3x256xf32> to vector<3x256xf32>
    %58 = vector.shape_cast %55 : vector<3x256xf32> to vector<1x3x256xf32>
    tpu.vector_store %arg9[%c0_33, %c0_34, %c0_35], %58 {strides = array<i32>} : memref<1x3x256xf32, #tpu.memory_space<vmem>>, vector<1x3x256xf32>,
    return
  }
  func.func @transform_0(%arg0: i32, %arg1: i32) -> (i32, i32, i32) {
    %c0_i32 = arith.constant 0 : i32
    %c0_i32_0 = arith.constant 0 : i32
    return %arg0, %c0_i32, %arg1 : i32, i32, i32
  }
  func.func @transform_1(%arg0: i32, %arg1: i32) -> (i32, i32) {
    %c0_i32 = arith.constant 0 : i32
    %c0_i32_0 = arith.constant 0 : i32
    %c0_i32_1 = arith.constant 0 : i32
    return %c0_i32, %c0_i32_0 : i32, i32
  }
  func.func @transform_2(%arg0: i32, %arg1: i32) -> (i32, i32) {
    %c0_i32 = arith.constant 0 : i32
    %c0_i32_0 = arith.constant 0 : i32
    %c0_i32_1 = arith.constant 0 : i32
    return %c0_i32, %c0_i32_0 : i32, i32
  }
  func.func @transform_3(%arg0: i32, %arg1: i32) -> (i32, i32) {
    %c0_i32 = arith.constant 0 : i32
    %c0_i32_0 = arith.constant 0 : i32
    %c0_i32_1 = arith.constant 0 : i32
    return %c0_i32, %c0_i32_0 : i32, i32
  }
  func.func @transform_4(%arg0: i32, %arg1: i32) -> (i32, i32) {
    %c0_i32 = arith.constant 0 : i32
    %c0_i32_0 = arith.constant 0 : i32
    %c0_i32_1 = arith.constant 0 : i32
    return %c0_i32, %c0_i32_0 : i32, i32
  }
  func.func @transform_5(%arg0: i32, %arg1: i32) -> (i32, i32) {
    %c0_i32 = arith.constant 0 : i32
    %c0_i32_0 = arith.constant 0 : i32
    %c0_i32_1 = arith.constant 0 : i32
    return %c0_i32, %c0_i32_0 : i32, i32
  }
  func.func @transform_6(%arg0: i32, %arg1: i32) -> (i32, i32) {
    %c0_i32 = arith.constant 0 : i32
    %c0_i32_0 = arith.constant 0 : i32
    %c0_i32_1 = arith.constant 0 : i32
    return %c0_i32, %c0_i32_0 : i32, i32
  }
  func.func @transform_7(%arg0: i32, %arg1: i32) -> (i32, i32, i32) {
    %c0_i32 = arith.constant 0 : i32
    %c0_i32_0 = arith.constant 0 : i32
    return %arg0, %c0_i32, %arg1 : i32, i32, i32
  }
}

</mosaic_0001>

<bundles_post_ra>
// kernel: tpu_custom_call.1
= control target key start
LH: loop header
LB: loop body
LE: loop exit
PB: predicated region body
PF: predicated region fallthrough
CT: control target
= control target key end

     0   :  { %s984_s24 = smov 0   ;;  %s986_s25 = smov 0   ;;  %s1091_s0 = inlined_call_operand.vmem [shape: f32[2,3,256], index: 0, kind: input, shape index: {}]   ;;  %s1092_s1 = inlined_call_operand.vmem [shape: f32[32,3], index: 1, kind: input, shape index: {}]   ;;  %s1093_s2 = inlined_call_operand.vmem [shape: f32[32,1], index: 2, kind: input, shape index: {}]   ;;  %s1094_s3 = inlined_call_operand.vmem [shape: bf16[32,32], index: 3, kind: input, shape index: {}]   ;;  %s1095_s4 = inlined_call_operand.vmem [shape: f32[32,1], index: 4, kind: input, shape index: {}]   ;;  %s1096_s5 = inlined_call_operand.vmem [shape: f32[32,3], index: 5, kind: input, shape index: {}]   ;;  %s1097_s6 = inlined_call_operand.vmem [shape: f32[3,1], index: 6, kind: input, shape index: {}]   ;;  %s1098_s7 = inlined_call_operand.vmem [shape: f32[2,3,256], index: 7, kind: output, shape index: {}]  }
   0x1   :  { %s988_s26 = smov 0  }
   0x2 LB: > { %s29_s27 = sadd.s32 1, %s935_s25  ;;  %p851_p0 = scmp.ge.s32.totalorder %s939_s26, 1  ;;  %s939_s26 = sphi %s988_s26, %s17_s26   ;;  %s935_s25 = sphi %s986_s25, %s1100_s25   ;;  %s931_s24 = sphi %s984_s24, %s1099_s24  }
   0x3   : > { %p31_p1 = scmp.ge.s32.totalorder %s29_s27, 2  ;;  %p258_p2 = scmp.lt.s32.totalorder %s939_s26, 3 }
   0x5   : > { %s1102_s27 = smov (%p31_p1, %s29_s27), 0  ;;  %p259_p3 = pnand %p851_p0, %p258_p2 }
   0x6   : > { %p299_p4 = scmp.lt.s32.totalorder (!%p259_p3), %s931_s24, 1 }
   0x7   : > { %262 = sbr.rel (%p259_p3) target bundleno = 424 (0x1a8), region = 48 }
   0xc   : > { %v321_v0 = vld [vmem:[%s1092_s1 + $0x10] sm:$0xff]  ;;  %v941_v1 = vmov 2   ;;  %v942_v2 = vmov 1   ;;  %v322_v3 = vld [vmem:[%s1092_s1 + $0x18] sm:$0xff]  ;;  %v319_v4 = vld [vmem:[%s1092_s1] sm:$0xff]  ;;  %v943_v5 = vmov 0   ;;  %v345_v24 = vlaneseq }
   0xd   : > { %898 = vset.pattern.permute.xlu0 %v941_v1  ;;  %897 = vset.pattern.permute.xlu1 %v942_v2  ;;  %v320_v6 = vld [vmem:[%s1092_s1 + $0x8] sm:$0xff]  ;;  %v456_v7 = vld [vmem:[%s1093_s2 + $0x18] sm:$0xff]  ;;  %v501_v8 = vld [vmem:[%s1095_s4] sm:$0xff]  ;;  %s1104_s24 = smov (!%p299_p4, %s931_s24), 1  ;;  %vm535_vm0 = vcmask 261120   ;;  %vm737_vm1 = vcmask 1040384  }
   0xe   : > { %419 = vperm.xlu0 %898, %v321_v0   ;;  %374 = vperm.xlu1 %897, %v321_v0   ;;  %v503_v9 = vld [vmem:[%s1095_s4 + $0x10] sm:$0xff]  ;;  %v603_v10 = vld [vmem:[%s1096_s5] sm:$0xff]  ;;  %v604_v13 = vld [vmem:[%s1096_s5 + $0x8] sm:$0xff]  ;;  %s864_s20 = sshll.u32 %s1104_s24, 3  ;;  %v346_v27 = vshrl.u32 %v345_v24, 7  ;;  %vm740_vm2 = vcmask 1041408  }
   0xf   : > { %574 = vmatprep.mubr.bf16.mxu0 %v943_v5  ;;  %584 = vmatprep.mubr.bf16.mxu1 %v943_v5  ;;  %v455_v11 = vld [vmem:[%s1093_s2 + $0x10] sm:$0xff]  ;;  %v453_v12 = vld [vmem:[%s1093_s2] sm:$0xff]  ;;  %v454_v14 = vld [vmem:[%s1093_s2 + $0x8] sm:$0xff]  ;;  %s306_s23 = scalar_lea.vmem %s1091_s0, %s864_s20  ;;  %s316_s11 = scalar_lea.vmem %s1098_s7, %s864_s20 }
  0x10   : > { %v502_v15 = vld [vmem:[%s1095_s4 + $0x8] sm:$0xff]  ;;  %v504_v16 = vld [vmem:[%s1095_s4 + $0x18] sm:$0xff]  ;;  %v605_v17 = vld [vmem:[%s1096_s5 + $0x10] sm:$0xff]  ;;  %v347_v31 = vsub.s32 0, %v346_v27  ;;  %v351_v32 = vsub.s32 1, %v346_v27 }
  0x11   : > { %v606_v18 = vld [vmem:[%s1096_s5 + $0x18] sm:$0xff]  ;;  %v743_v19 = vld [vmem:[%s1097_s6] sm:$0x7] }
  0x12   : > { %378 = vperm.xlu1 %897, %v322_v3   ;;  %411 = vperm.xlu0 %898, %v319_v4   ;;  %v323_v29 = vld [vmem:[%s306_s23] ss:$4 sm:$0x3]  ;;  %v856_v33 = vld [vmem:[%s306_s23 + $0x1] ss:$4 sm:$0x3] }
  0x13   : > { %v348_v34 = vrot.slane %v323_v29, %v347_v31  ;;  %v857_v36 = vld [vmem:[%s306_s23 + $0x2] ss:$4 sm:$0x3]  ;;  %v352_v37 = vrot.slane %v323_v29, %v351_v32  ;;  %v385_v38 = vrot.slane %v856_v33, %v347_v31  ;;  %v389_v40 = vrot.slane %v856_v33, %v351_v32 }
  0x14   : > { %v430_v43 = vrot.slane %v857_v36, %v347_v31  ;;  %v434_v46 = vrot.slane %v857_v36, %v351_v32 }
  0x16   : > { %899 = vset.pattern.permute.xlu1 %v941_v1  ;;  %902 = vset.pattern.permute.xlu0 %v943_v5 }
  0x17   : > { %423 = vperm.xlu1 %899, %v322_v3   ;;  %336 = vperm.xlu0 %902, %v321_v0  }
  0x1b   : > { %900 = vset.pattern.permute.xlu1 %v943_v5  ;;  %341 = vperm.xlu0 %902, %v322_v3  }
  0x1c   : > { %326 = vperm.xlu1 %900, %v319_v4  }
  0x1f   : > { %331 = vperm.xlu0 %902, %v320_v6  }
  0x20   : > { %901 = vset.pattern.permute.xlu1 %v942_v2 }
  0x21   : > { %366 = vperm.xlu1 %901, %v319_v4  }
  0x23   : > { %474 = vperm.xlu0 %902, %v456_v7  }
  0x25   : > { %370 = vperm.xlu1 %901, %v320_v6  }
  0x27   : > { %507 = vperm.xlu0 %902, %v501_v8  }
  0x29   : > { %903 = vset.pattern.permute.xlu1 %v941_v1 }
  0x2a   : > { %415 = vperm.xlu1 %903, %v320_v6  }
  0x2b   : > { %517 = vperm.xlu0 %902, %v503_v9  }
  0x2e   : > { %904 = vset.pattern.permute.xlu1 %v943_v5 }
  0x2f   : > { %609 = vperm.xlu0 %902, %v603_v10   ;;  %469 = vperm.xlu1 %904, %v455_v11  }
  0x33   : > { %459 = vperm.xlu1 %904, %v453_v12   ;;  %907 = vset.pattern.permute.xlu0 %v941_v1 }
  0x34   : > { %700 = vperm.xlu0 %907, %v604_v13  }
  0x37   : > { %464 = vperm.xlu1 %904, %v454_v14  }
  0x38   : > { %704 = vperm.xlu0 %907, %v605_v17  }
  0x3b   : > { %512 = vperm.xlu1 %904, %v502_v15  }
  0x3c   : > { %910 = vset.pattern.permute.xlu0 %v942_v2 }
  0x3d   : > { %654 = vperm.xlu0 %910, %v603_v10  }
  0x3f   : > { %522 = vperm.xlu1 %904, %v504_v16  }
  0x41   : > { %666 = vperm.xlu0 %910, %v606_v18  }
  0x43   : > { %614 = vperm.xlu1 %904, %v604_v13  }
  0x45   : > { %914 = vset.pattern.permute.xlu0 %v943_v5 }
  0x47   : > { %905 = vset.pattern.permute.xlu1 %v942_v2 }
  0x48   : > { %658 = vperm.xlu1 %905, %v604_v13  }
  0x4c   : > { %906 = vset.pattern.permute.xlu1 %v941_v1 }
  0x4d   : > { %696 = vperm.xlu1 %906, %v603_v10  }
  0x51   : > { %908 = vset.pattern.permute.xlu1 %v943_v5 }
  0x52   : > { %619 = vperm.xlu1 %908, %v605_v17  }
  0x56   : > { %909 = vset.pattern.permute.xlu1 %v942_v2 }
  0x57   : > { %662 = vperm.xlu1 %909, %v605_v17  }
  0x5b   : > { %911 = vset.pattern.permute.xlu1 %v943_v5 }
  0x5c   : > { %624 = vperm.xlu1 %911, %v606_v18  }
  0x60   : > { %912 = vset.pattern.permute.xlu1 %v941_v1 }
  0x61   : > { %708 = vperm.xlu1 %912, %v606_v18  }
  0x65   : > { %913 = vset.pattern.permute.xlu1 %v943_v5 }
  0x66   : > { %746 = vperm.xlu1 %913, %v743_v19  }
  0x89   : > { %v375_v20 = vpop.permute.xlu1 %374  ;;  %v420_v21 = vpop.permute.xlu0 %419 }
  0x8a   : > { %v396_v51 = vmul.f32 %v385_v38, %v375_v20  ;;  %v397_v52 = vmul.f32 %v389_v40, %v375_v20  ;;  %v441_v54 = vmul.f32 %v430_v43, %v420_v21  ;;  %v442_v56 = vmul.f32 %v434_v46, %v420_v21 }
  0x8d   : > { %v379_v22 = vpop.permute.xlu1 %378  ;;  %v412_v23 = vpop.permute.xlu0 %411 }
  0x8e   : > { %v398_v44 = vmul.f32 %v385_v38, %v379_v22  ;;  %v399_v47 = vmul.f32 %v389_v40, %v379_v22  ;;  %v437_v17 = vmul.f32 %v430_v43, %v412_v23  ;;  %v438_v18 = vmul.f32 %v434_v46, %v412_v23 }
  0x92   : > { %v424_v25 = vpop.permute.xlu1 %423  ;;  %v337_v26 = vpop.permute.xlu0 %336 }
  0x93   : > { %v359_v48 = vmul.f32 %v348_v34, %v337_v26  ;;  %v360_v49 = vmul.f32 %v352_v37, %v337_v26  ;;  %v443_v55 = vmul.f32 %v430_v43, %v424_v25  ;;  %v444_v57 = vmul.f32 %v434_v46, %v424_v25 }
  0x95   : > { %v404_v58 = vadd.f32 %v396_v51, %v359_v48  ;;  %v405_v59 = vadd.f32 %v397_v52, %v360_v49 }
  0x96   : > { %v342_v30 = vpop.permute.xlu0 %341 }
  0x97   : > { %v327_v28 = vpop.permute.xlu1 %326  ;;  %v361_v39 = vmul.f32 %v348_v34, %v342_v30  ;;  %v362_v41 = vmul.f32 %v352_v37, %v342_v30  ;;  %v449_v6 = vadd.f32 %v441_v54, %v404_v58  ;;  %v450_v7 = vadd.f32 %v442_v56, %v405_v59 }
  0x98   : > { %v355_v2 = vmul.f32 %v348_v34, %v327_v28  ;;  %v356_v4 = vmul.f32 %v352_v37, %v327_v28 }
  0x99   : > { %v406_v50 = vadd.f32 %v398_v44, %v361_v39  ;;  %v407_v53 = vadd.f32 %v399_v47, %v362_v41 }
  0x9a   : > { %v332_v42 = vpop.permute.xlu0 %331 }
  0x9b   : > { %v451_v63 = vadd.f32 %v443_v55, %v406_v50  ;;  %v452_v1 = vadd.f32 %v444_v57, %v407_v53  ;;  %v357_v8 = vmul.f32 %v348_v34, %v332_v42  ;;  %v358_v9 = vmul.f32 %v352_v37, %v332_v42 }
  0x9c   : > { %v367_v35 = vpop.permute.xlu1 %366 }
  0x9d   : > { %v392_v62 = vmul.f32 %v385_v38, %v367_v35  ;;  %v393_v0 = vmul.f32 %v389_v40, %v367_v35 }
  0x9e   : > { %v475_v60 = vpop.permute.xlu0 %474 }
  0x9f   : > { %v483_v3 = vadd.f32 %v475_v60, %v451_v63  ;;  %v484_v5 = vadd.f32 %v475_v60, %v452_v1  ;;  %v400_v10 = vadd.f32 %v392_v62, %v355_v2  ;;  %v401_v13 = vadd.f32 %v393_v0, %v356_v4 }
  0xa0   : > { %v371_v45 = vpop.permute.xlu1 %370 }
  0xa1   : > { %v394_v11 = vmul.f32 %v385_v38, %v371_v45  ;;  %v395_v14 = vmul.f32 %v389_v40, %v371_v45  ;;  %v491_v19 = vmax.f32 %v483_v3, 0.0  ;;  %v492_v21 = vmax.f32 %v484_v5, 0.0  ;;  %v915_v45 = vld [vmem:[%s1094_s3] sm:$0xff]  }
  0xa2   : > { %v445_v28 = vadd.f32 %v437_v17, %v400_v10  ;;  %v446_v30 = vadd.f32 %v438_v18, %v401_v13  ;;  %v508_v49 = vpop.permute.xlu0 %507 }
  0xa3   : > { %v402_v26 = vadd.f32 %v394_v11, %v357_v8  ;;  %v403_v29 = vadd.f32 %v395_v14, %v358_v9 }
  0xa5   : > { %v416_v61 = vpop.permute.xlu1 %415 }
  0xa6   : > { %v439_v20 = vmul.f32 %v430_v43, %v416_v61  ;;  %v440_v22 = vmul.f32 %v434_v46, %v416_v61  ;;  %v916_v46 = vld [vmem:[%s1094_s3 + $0x8] sm:$0xff]   ;;  %v518_v51 = vpop.permute.xlu0 %517 }
  0xa8   : > { %v447_v33 = vadd.f32 %v439_v20, %v402_v26  ;;  %v448_v36 = vadd.f32 %v440_v22, %v403_v29 }
  0xaa   : > { %v470_v12 = vpop.permute.xlu1 %469  ;;  %v610_v53 = vpop.permute.xlu0 %609 }
  0xab   : > { %v481_v15 = vadd.f32 %v470_v12, %v449_v6  ;;  %v482_v16 = vadd.f32 %v470_v12, %v450_v7 }
  0xad   : > { %v489_v24 = vmax.f32 %v481_v15, 0.0  ;;  %v490_v25 = vmax.f32 %v482_v16, 0.0 }
  0xae   : > { %v460_v27 = vpop.permute.xlu1 %459 }
  0xaf   : > { %v500_v31 = vpack.c.bf16 %v492_v21, %v490_v25  ;;  %v499_v32 = vpack.c.bf16 %v491_v19, %v489_v24  ;;  %v477_v34 = vadd.f32 %v460_v27, %v445_v28  ;;  %v478_v35 = vadd.f32 %v460_v27, %v446_v30  ;;  %v701_v55 = vpop.permute.xlu0 %700 }
  0xb1   : > { %554 = vmatprep.subr.bf16.mxu0 %v500_v31  ;;  %866 = vmatprep.subr.bf16.mxu1 %v500_v31  ;;  %v485_v39 = vmax.f32 %v477_v34, 0.0  ;;  %v486_v40 = vmax.f32 %v478_v35, 0.0 }
  0xb2   : > { %v465_v23 = vpop.permute.xlu1 %464  ;;  %555 = vmatpush1.bf16.msra.mxu0 %v499_v32  ;;  %868 = vmatpush1.bf16.msra.mxu1 %v499_v32 }
  0xb3   : > { %v479_v37 = vadd.f32 %v465_v23, %v447_v33  ;;  %v480_v38 = vadd.f32 %v465_v23, %v448_v36  ;;  %v705_v57 = vpop.permute.xlu0 %704 }
  0xb5   : > { %v487_v41 = vmax.f32 %v479_v37, 0.0  ;;  %v488_v42 = vmax.f32 %v480_v38, 0.0 }
  0xb6   : > { %v513_v47 = vpop.permute.xlu1 %512 }
  0xb7   : > { %v498_v43 = vpack.c.bf16 %v488_v42, %v486_v40  ;;  %v497_v44 = vpack.c.bf16 %v487_v41, %v485_v39 }
  0xb8   : > { %v655_v5 = vpop.permute.xlu0 %654 }
  0xb9   : > { %556 = vmatprep.subr.bf16.mxu0 %v498_v43  ;;  %867 = vmatprep.subr.bf16.mxu1 %v498_v43 }
  0xba   : > { %557 = vmatpush1.bf16.msra.mxu0 %v497_v44  ;;  %869 = vmatpush1.bf16.msra.mxu1 %v497_v44  ;;  %v523_v48 = vpop.permute.xlu1 %522 }
  0xbc   : > { %v667_v34 = vpop.permute.xlu0 %666 }
  0xbd   : > { %860 = vmatmul.mubr.msk.bf16.vlgmr.msra.gmra.mxu0 %vm535_vm0, %v915_v45  ;;  %861 = vmatmul.mubr.msk.bf16.vlgmr.msra.gmra.mxu1 %vm535_vm0, %v916_v46 }
  0xbe   : > { %v615_v50 = vpop.permute.xlu1 %614 }
  0xc3   : > { %v659_v52 = vpop.permute.xlu1 %658 }
  0xc8   : > { %v697_v54 = vpop.permute.xlu1 %696 }
  0xcd   : > { %v620_v56 = vpop.permute.xlu1 %619 }
  0xd2   : > { %v663_v58 = vpop.permute.xlu1 %662 }
  0xd7   : > { %v625_v10 = vpop.permute.xlu1 %624 }
  0xdc   : > { %v709_v42 = vpop.permute.xlu1 %708 }
 0x17d   : > { %v576_v59 = vpop.f32.mrf.mxu0  ;;  %v586_v60 = vpop.f32.mrf.mxu1 }
 0x17e   : > { %v577_v61 = vadd.f32 %v576_v59, %v508_v49  ;;  %v587_v62 = vadd.f32 %v586_v60, %v518_v51 }
 0x17f   : > { %v578_v63 = vpop.f32.mrf.mxu0  ;;  %v588_v0 = vpop.f32.mrf.mxu1 }
 0x180   : > { %v595_v1 = vmax.f32 %v577_v61, 0.0  ;;  %v599_v2 = vmax.f32 %v587_v62, 0.0  ;;  %v579_v3 = vadd.f32 %v578_v63, %v508_v49  ;;  %v589_v4 = vadd.f32 %v588_v0, %v518_v51 }
 0x181   : > { %v580_v6 = vpop.f32.mrf.mxu0  ;;  %v590_v7 = vpop.f32.mrf.mxu1 }
 0x182   : > { %v627_v8 = vmul.f32 %v610_v53, %v595_v1  ;;  %v711_v9 = vmul.f32 %v697_v54, %v595_v1  ;;  %v631_v11 = vmul.f32 %v620_v56, %v599_v2  ;;  %v673_v12 = vmul.f32 %v663_v58, %v599_v2 }
 0x183   : > { %v596_v13 = vmax.f32 %v579_v3, 0.0  ;;  %v600_v14 = vmax.f32 %v589_v4, 0.0  ;;  %v582_v15 = vpop.f32.mrf.mxu0  ;;  %v592_v16 = vpop.f32.mrf.mxu1  ;;  %v581_v17 = vadd.f32 %v580_v6, %v513_v47  ;;  %v591_v18 = vadd.f32 %v590_v7, %v523_v48 }
 0x184   : > { %v583_v19 = vadd.f32 %v582_v15, %v513_v47  ;;  %v593_v20 = vadd.f32 %v592_v16, %v523_v48  ;;  %v715_v21 = vmul.f32 %v705_v57, %v599_v2  ;;  %v669_v25 = vmul.f32 %v655_v5, %v595_v1 }
 0x185   : > { %v628_v22 = vmul.f32 %v610_v53, %v596_v13  ;;  %v712_v24 = vmul.f32 %v697_v54, %v596_v13  ;;  %v632_v26 = vmul.f32 %v620_v56, %v600_v14  ;;  %v674_v27 = vmul.f32 %v663_v58, %v600_v14 }
 0x186   : > { %v597_v28 = vmax.f32 %v581_v17, 0.0  ;;  %v601_v29 = vmax.f32 %v591_v18, 0.0  ;;  %v716_v30 = vmul.f32 %v705_v57, %v600_v14  ;;  %v670_v31 = vmul.f32 %v655_v5, %v596_v13 }
 0x187   : > { %v598_v32 = vmax.f32 %v583_v19, 0.0  ;;  %v602_v33 = vmax.f32 %v593_v20, 0.0 }
 0x188   : > { %v629_v35 = vmul.f32 %v615_v50, %v597_v28  ;;  %v671_v36 = vmul.f32 %v659_v52, %v597_v28  ;;  %v713_v23 = vmul.f32 %v701_v55, %v597_v28  ;;  %v633_v37 = vmul.f32 %v625_v10, %v601_v29 }
 0x189   : > { %v630_v38 = vmul.f32 %v615_v50, %v598_v32  ;;  %v672_v39 = vmul.f32 %v659_v52, %v598_v32  ;;  %v714_v40 = vmul.f32 %v701_v55, %v598_v32  ;;  %v634_v41 = vmul.f32 %v625_v10, %v602_v33 }
 0x18a   : > { %v635_v43 = vadd.f32 %v629_v35, %v627_v8  ;;  %v719_v44 = vadd.f32 %v713_v23, %v711_v9  ;;  %v675_v45 = vmul.f32 %v667_v34, %v601_v29  ;;  %v676_v46 = vmul.f32 %v667_v34, %v602_v33 }
 0x18b   : > { %v644_v47 = vadd.f32 %v630_v38, %v628_v22  ;;  %v728_v48 = vadd.f32 %v714_v40, %v712_v24  ;;  %v677_v49 = vadd.f32 %v671_v36, %v669_v25  ;;  %v686_v51 = vadd.f32 %v672_v39, %v670_v31 }
 0x18c   : > { %v636_v53 = vadd.f32 %v635_v43, %v631_v11  ;;  %v717_v54 = vmul.f32 %v709_v42, %v601_v29  ;;  %v718_v56 = vmul.f32 %v709_v42, %v602_v33  ;;  %v720_v57 = vadd.f32 %v719_v44, %v715_v21 }
 0x18d   : > { %v645_v58 = vadd.f32 %v644_v47, %v632_v26  ;;  %v678_v59 = vadd.f32 %v677_v49, %v673_v12  ;;  %v687_v60 = vadd.f32 %v686_v51, %v674_v27  ;;  %v729_v50 = vadd.f32 %v728_v48, %v716_v30 }
 0x18e   : > { %v637_v52 = vadd.f32 %v636_v53, %v633_v37  ;;  %v721_v55 = vadd.f32 %v720_v57, %v717_v54  ;;  %v747_v37 = vpop.permute.xlu1 %746 }
 0x18f   : > { %v646_v61 = vadd.f32 %v645_v58, %v634_v41  ;;  %v679_v62 = vadd.f32 %v678_v59, %v675_v45  ;;  %v688_v63 = vadd.f32 %v687_v60, %v676_v46  ;;  %v730_v0 = vadd.f32 %v729_v50, %v718_v56 }
 0x190   : > { %v638_v1 = vrot.slane %v637_v52, 4  ;;  %v722_v2 = vrot.slane %v721_v55, 4 }
 0x191   : > { %v647_v3 = vrot.slane %v646_v61, 4  ;;  %v680_v4 = vrot.slane %v679_v62, 4  ;;  %v689_v5 = vrot.slane %v688_v63, 4  ;;  %v731_v6 = vrot.slane %v730_v0, 4 }
 0x192   : > { %v639_v7 = vadd.f32 %v638_v1, %v637_v52  ;;  %v723_v8 = vadd.f32 %v722_v2, %v721_v55 }
 0x193   : > { %v648_v9 = vadd.f32 %v647_v3, %v646_v61  ;;  %v681_v10 = vadd.f32 %v680_v4, %v679_v62  ;;  %v690_v11 = vadd.f32 %v689_v5, %v688_v63  ;;  %v732_v12 = vadd.f32 %v731_v6, %v730_v0 }
 0x194   : > { %v640_v13 = vrot.slane %v639_v7, 2  ;;  %v724_v14 = vrot.slane %v723_v8, 2 }
 0x195   : > { %v649_v15 = vrot.slane %v648_v9, 2  ;;  %v682_v16 = vrot.slane %v681_v10, 2  ;;  %v691_v17 = vrot.slane %v690_v11, 2  ;;  %v733_v18 = vrot.slane %v732_v12, 2 }
 0x196   : > { %v725_v19 = vadd.f32 %v724_v14, %v723_v8  ;;  %v641_v20 = vadd.f32 %v640_v13, %v639_v7 }
 0x197   : > { %v683_v21 = vadd.f32 %v682_v16, %v681_v10  ;;  %v692_v22 = vadd.f32 %v691_v17, %v690_v11  ;;  %v734_v24 = vadd.f32 %v733_v18, %v732_v12  ;;  %v650_v25 = vadd.f32 %v649_v15, %v648_v9 }
 0x198   : > { %v642_v26 = vrot.slane %v641_v20, 1  ;;  %v726_v27 = vrot.slane %v725_v19, 1 }
 0x199   : > { %v684_v28 = vrot.slane %v683_v21, 1  ;;  %v693_v29 = vrot.slane %v692_v22, 1  ;;  %v651_v30 = vrot.slane %v650_v25, 1  ;;  %v735_v31 = vrot.slane %v734_v24, 1 }
 0x19a   : > { %v643_v32 = vadd.f32 %v642_v26, %v641_v20  ;;  %v727_v33 = vadd.f32 %v726_v27, %v725_v19 }
 0x19b   : > { %v652_v34 = vadd.f32 %v651_v30, %v650_v25  ;;  %v685_v35 = vadd.f32 %v684_v28, %v683_v21  ;;  %v694_v36 = vadd.f32 %v693_v29, %v692_v22  ;;  %v736_v23 = vadd.f32 %v735_v31, %v734_v24 }
 0x19d   : > { %v738_v38 = vsel %vm737_vm1, %v643_v32, %v685_v35  ;;  %v739_v39 = vsel %vm737_vm1, %v652_v34, %v694_v36 }
 0x19e   : > { %v741_v40 = vsel %vm740_vm2, %v738_v38, %v727_v33  ;;  %v742_v41 = vsel %vm740_vm2, %v739_v39, %v736_v23 }
 0x19f   : > { %v749_v42 = vadd.f32 %v747_v37, %v741_v40  ;;  %v750_v43 = vadd.f32 %v747_v37, %v742_v41 }
 0x1a1   : > { %v751_v44 = vmax.f32 %v749_v42, 0.0  ;;  %v752_v45 = vmax.f32 %v750_v43, 0.0 }
 0x1a3   : > { %v753_v46 = vmin.f32 %v751_v44, 1.0  ;;  %v754_v47 = vmin.f32 %v752_v45, 1.0 }
 0x1a5   : > { %v757_v48 = vcombine.low %v753_v46, %v754_v47 }
 0x1a7   : > { %759 = vst [vmem:[%s316_s11] sm:$0x77] %v757_v48 }
 0x1a8 PF: > { %s17_s26 = sadd.s32 1, %s939_s26   ;;  %s1099_s24 = smov %s935_s25 }
 0x1a9   : > { %p14_p5 = scmp.ge.s32.totalorder %s17_s26, 4   ;;  %s1100_s25 = smov %s1102_s27 }
 0x1ab   :  { %16 = sbr.rel (!%p14_p5) target bundleno = 2 (0x2), region = 80 }

</bundles_post_ra>
